<compile_context>
chip_gen: v6e
topology: v6e:2x2x1
jax: 0.10.0
libtpu: 0.0.40
codegen_flags: <defaults>
</compile_context>

<pallas_src>
import functools

import jax
import jax.numpy as jnp
import numpy as np
from jax.experimental import pallas as pl
from jax.experimental.pallas import tpu as pltpu

INPUT_DIM = 2          # len(['id', 'x'])
HIDDEN = (20, 5)
OUT_DIM = 1

# Default batch tile (lane axis). 64K rows => ~0.5 MiB x-tile, ~5 MiB h1,
# ~1.3 MiB h2, ~0.25 MiB out per buffer: fits comfortably on v5e/v6e/v7x and
# keeps the ~0.35 us per-grid-step overhead well amortized.
DEFAULT_TILE_N = 65536


def _round_up(x, m):
    return ((x + m - 1) // m) * m


def _menet_kernel(x_ref, w1_ref, b1_ref, w2_ref, b2_ref, w3_ref, b3_ref, o_ref):
    # x_ref: (INPUT_DIM, TILE_N) -- batch on the lane axis, features on sublanes.
    x = x_ref[...]
    # fc1 + ReLU : (20, 2) @ (2, TILE_N) -> (20, TILE_N)
    h1 = jnp.dot(w1_ref[...], x, preferred_element_type=jnp.float32)
    h1 = jnp.maximum(h1 + b1_ref[...], 0.0)
    # fc2 + ReLU : (5, 20) @ (20, TILE_N) -> (5, TILE_N)
    h2 = jnp.dot(w2_ref[...], h1, preferred_element_type=jnp.float32)
    h2 = jnp.maximum(h2 + b2_ref[...], 0.0)
    # fc3 : (1, 5) @ (5, TILE_N) -> (1, TILE_N)
    o = jnp.dot(w3_ref[...], h2, preferred_element_type=jnp.float32) + b3_ref[...]
    o_ref[...] = o.astype(o_ref.dtype)


@functools.partial(jax.jit, static_argnames=("tile_n",))
def menet_forward(x, params, tile_n=DEFAULT_TILE_N):
    """x: (N, INPUT_DIM) f32.  params: PyTorch-layout weights (out,in), biases (out,1)."""
    n = x.shape[0]
    w1, b1 = params["w1"], params["b1"]
    w2, b2 = params["w2"], params["b2"]
    w3, b3 = params["w3"], params["b3"]
    h1, h2 = HIDDEN

    # Tile size: clamp for small batches, force a multiple of 128 lanes.
    tile_n = _round_up(max(1, min(tile_n, n)), 128)
    n_pad = _round_up(n, tile_n)

    # Transpose so batch is the lane (last) dim; pad batch to a tile multiple.
    # (transpose + pad fuse into one XLA copy; padding waste <= tile_n - 1 rows)
    x_t = x.T                                           # (INPUT_DIM, N)
    if n_pad != n:
        x_t = jnp.pad(x_t, ((0, 0), (0, n_pad - n)))
    grid = (n_pad // tile_n,)

    flops = 2 * n_pad * (INPUT_DIM * h1 + h1 * h2 + h2 * OUT_DIM)
    bytes_accessed = 4 * n_pad * (INPUT_DIM + OUT_DIM) + 4 * (
        w1.size + b1.size + w2.size + b2.size + w3.size + b3.size)

    out_t = pl.pallas_call(
        _menet_kernel,
        out_shape=jax.ShapeDtypeStruct((OUT_DIM, n_pad), jnp.float32),
        grid=grid,
        in_specs=[
            pl.BlockSpec((INPUT_DIM, tile_n), lambda i: (0, i)),   # x tile (streamed)
            pl.BlockSpec((h1, INPUT_DIM), lambda i: (0, 0)),       # w1 (VMEM-resident)
            pl.BlockSpec((h1, 1), lambda i: (0, 0)),               # b1
            pl.BlockSpec((h2, h1), lambda i: (0, 0)),              # w2
            pl.BlockSpec((h2, 1), lambda i: (0, 0)),               # b2
            pl.BlockSpec((OUT_DIM, h2), lambda i: (0, 0)),         # w3
            pl.BlockSpec((OUT_DIM, 1), lambda i: (0, 0)),          # b3
        ],
        out_specs=pl.BlockSpec((OUT_DIM, tile_n), lambda i: (0, i)),
        compiler_params=pltpu.CompilerParams(
            dimension_semantics=("parallel",)),
        cost_estimate=pl.CostEstimate(
            flops=flops, transcendentals=0, bytes_accessed=bytes_accessed),
    )(x_t, w1, b1, w2, b2, w3, b3)

    # (1, n_pad) sliced to (1, n) then reshaped to (n, 1): same linear layout,
    # so this is a copy-free reshape rather than a transpose.
    return jnp.reshape(out_t[:, :n], (n, OUT_DIM))


def init_params(key):
    """nn.Linear-style U(-1/sqrt(fan_in), 1/sqrt(fan_in)); weights (out,in), biases (out,1)."""
    dims = [(INPUT_DIM, HIDDEN[0]), (HIDDEN[0], HIDDEN[1]), (HIDDEN[1], OUT_DIM)]
    params = {}
    keys = jax.random.split(key, 2 * len(dims))
    for i, (fan_in, fan_out) in enumerate(dims):
        bound = 1.0 / np.sqrt(fan_in)
        w = jax.random.uniform(keys[2 * i], (fan_out, fan_in),
                               minval=-bound, maxval=bound, dtype=jnp.float32)
        b = jax.random.uniform(keys[2 * i + 1], (fan_out, 1),
                               minval=-bound, maxval=bound, dtype=jnp.float32)
        params[f"w{i + 1}"] = w
        params[f"b{i + 1}"] = b
    return params


def menet_ref(x, params):
    """Pure-JAX reference matching the PyTorch forward (x @ W.T + b)."""
    h = jnp.maximum(x @ params["w1"].T + params["b1"].T, 0.0)
    h = jnp.maximum(h @ params["w2"].T + params["b2"].T, 0.0)
    return h @ params["w3"].T + params["b3"].T


if __name__ == "__main__":
    key = jax.random.PRNGKey(0)
    k_param, k_x, k_x2 = jax.random.split(key, 3)
    params = init_params(k_param)

    # Small demo batch (matches the module's tiny 2-feature input).
    batch = 8
    x = jax.random.normal(k_x, (batch, INPUT_DIM), dtype=jnp.float32)
    out = jax.block_until_ready(menet_forward(x, params))
    ref = menet_ref(x, params)
    np.testing.assert_allclose(np.asarray(out), np.asarray(ref), rtol=1e-5, atol=1e-5)
    assert out.shape == (batch, OUT_DIM)

    # Larger (still small) batch exercising the multi-step pipelined grid with a
    # non-tile-multiple N (padding + masked tail path).
    big = 1000
    x_big = jax.random.normal(k_x2, (big, INPUT_DIM), dtype=jnp.float32)
    out_big = jax.block_until_ready(menet_forward(x_big, params, tile_n=256))
    ref_big = menet_ref(x_big, params)
    np.testing.assert_allclose(np.asarray(out_big), np.asarray(ref_big),
                               rtol=1e-5, atol=1e-5)
    assert out_big.shape == (big, OUT_DIM)

    print("KERNEL_OK")
</pallas_src>

<mosaic_0001>
module attributes {stable_mosaic.version = 11 : i64} {
  func.func @_menet_kernel(%arg0: i32, %arg1: memref<2x128xf32, #tpu.memory_space<vmem>>, %arg2: memref<20x2xf32, #tpu.memory_space<vmem>>, %arg3: memref<20x1xf32, #tpu.memory_space<vmem>>, %arg4: memref<5x20xf32, #tpu.memory_space<vmem>>, %arg5: memref<5x1xf32, #tpu.memory_space<vmem>>, %arg6: memref<1x5xf32, #tpu.memory_space<vmem>>, %arg7: memref<1x1xf32, #tpu.memory_space<vmem>>, %arg8: memref<1x128xf32, #tpu.memory_space<vmem>>) attributes {dimension_semantics = [#tpu.dimension_semantics<parallel>], iteration_bounds = array<i64: 1>, scalar_prefetch = 0 : i64, scratch_operands = 0 : i64, tpu.core_type = #tpu.core_type<tc>, window_params = [{transform_indices = @transform_0, window_bounds = array<i64: 2, 128>}, {pipeline_mode = #tpu.pipeline_mode<synchronous>, transform_indices = @transform_1, window_bounds = array<i64: 20, 2>}, {pipeline_mode = #tpu.pipeline_mode<synchronous>, transform_indices = @transform_2, window_bounds = array<i64: 20, 1>}, {pipeline_mode = #tpu.pipeline_mode<synchronous>, transform_indices = @transform_3, window_bounds = array<i64: 5, 20>}, {pipeline_mode = #tpu.pipeline_mode<synchronous>, transform_indices = @transform_4, window_bounds = array<i64: 5, 1>}, {pipeline_mode = #tpu.pipeline_mode<synchronous>, transform_indices = @transform_5, window_bounds = array<i64: 1, 5>}, {pipeline_mode = #tpu.pipeline_mode<synchronous>, transform_indices = @transform_6, window_bounds = array<i64: 1, 1>}, {transform_indices = @transform_7, window_bounds = array<i64: 1, 128>}]} {
    %c0 = arith.constant 0 : index
    %c0_0 = arith.constant 0 : index
    %0 = vector.load %arg1[%c0, %c0_0] : memref<2x128xf32, #tpu.memory_space<vmem>>, vector<2x128xf32>
    %c0_1 = arith.constant 0 : index
    %c0_2 = arith.constant 0 : index
    %1 = vector.load %arg2[%c0_1, %c0_2] : memref<20x2xf32, #tpu.memory_space<vmem>>, vector<20x2xf32>
    %cst = arith.constant dense<0.000000e+00> : vector<20x128xf32>
    %2 = tpu.matmul %1, %0, %cst {dimension_numbers = #tpu.dot_dimension_numbers<[1], [0], [0], [1], [0, 0, 1, 1], [], []>} : vector<20x2xf32>, vector<2x128xf32>, vector<20x128xf32> -> vector<20x128xf32>
    %c0_3 = arith.constant 0 : index
    %c0_4 = arith.constant 0 : index
    %3 = vector.load %arg3[%c0_3, %c0_4] : memref<20x1xf32, #tpu.memory_space<vmem>>, vector<20x1xf32>
    %4 = vector.broadcast %3 : vector<20x1xf32> to vector<20x128xf32>
    %5 = arith.addf %2, %4 : vector<20x128xf32>
    %cst_5 = arith.constant 0.000000e+00 : f32
    %6 = vector.broadcast %cst_5 : f32 to vector<20x128xf32>
    %7 = arith.maximumf %5, %6 : vector<20x128xf32>
    %c0_6 = arith.constant 0 : index
    %c0_7 = arith.constant 0 : index
    %8 = vector.load %arg4[%c0_6, %c0_7] : memref<5x20xf32, #tpu.memory_space<vmem>>, vector<5x20xf32>
    %cst_8 = arith.constant dense<0.000000e+00> : vector<5x128xf32>
    %9 = tpu.matmul %8, %7, %cst_8 {dimension_numbers = #tpu.dot_dimension_numbers<[1], [0], [0], [1], [0, 0, 1, 1], [], []>} : vector<5x20xf32>, vector<20x128xf32>, vector<5x128xf32> -> vector<5x128xf32>
    %c0_9 = arith.constant 0 : index
    %c0_10 = arith.constant 0 : index
    %10 = vector.load %arg5[%c0_9, %c0_10] : memref<5x1xf32, #tpu.memory_space<vmem>>, vector<5x1xf32>
    %11 = vector.broadcast %10 : vector<5x1xf32> to vector<5x128xf32>
    %12 = arith.addf %9, %11 : vector<5x128xf32>
    %cst_11 = arith.constant 0.000000e+00 : f32
    %13 = vector.broadcast %cst_11 : f32 to vector<5x128xf32>
    %14 = arith.maximumf %12, %13 : vector<5x128xf32>
    %c0_12 = arith.constant 0 : index
    %c0_13 = arith.constant 0 : index
    %15 = vector.load %arg6[%c0_12, %c0_13] : memref<1x5xf32, #tpu.memory_space<vmem>>, vector<1x5xf32>
    %cst_14 = arith.constant dense<0.000000e+00> : vector<1x128xf32>
    %16 = tpu.matmul %15, %14, %cst_14 {dimension_numbers = #tpu.dot_dimension_numbers<[1], [0], [0], [1], [0, 0, 1, 1], [], []>} : vector<1x5xf32>, vector<5x128xf32>, vector<1x128xf32> -> vector<1x128xf32>
    %c0_15 = arith.constant 0 : index
    %c0_16 = arith.constant 0 : index
    %17 = vector.load %arg7[%c0_15, %c0_16] : memref<1x1xf32, #tpu.memory_space<vmem>>, vector<1x1xf32>
    %18 = vector.broadcast %17 : vector<1x1xf32> to vector<1x128xf32>
    %19 = arith.addf %16, %18 : vector<1x128xf32>
    %c0_17 = arith.constant 0 : index
    %c0_18 = arith.constant 0 : index
    %20 = vector.load %arg8[%c0_17, %c0_18] : memref<1x128xf32, #tpu.memory_space<vmem>>, vector<1x128xf32>
    tpu.vector_store %arg8[%c0_17, %c0_18], %19 {strides = array<i32>} : memref<1x128xf32, #tpu.memory_space<vmem>>, vector<1x128xf32>,
    return
  }
  func.func @transform_0(%arg0: i32) -> (i32, i32) {
    %c0_i32 = arith.constant 0 : i32
    %c0_i32_0 = arith.constant 0 : i32
    return %c0_i32, %arg0 : i32, i32
  }
  func.func @transform_1(%arg0: i32) -> (i32, i32) {
    %c0_i32 = arith.constant 0 : i32
    %c0_i32_0 = arith.constant 0 : i32
    %c0_i32_1 = arith.constant 0 : i32
    return %c0_i32, %c0_i32_0 : i32, i32
  }
  func.func @transform_2(%arg0: i32) -> (i32, i32) {
    %c0_i32 = arith.constant 0 : i32
    %c0_i32_0 = arith.constant 0 : i32
    %c0_i32_1 = arith.constant 0 : i32
    return %c0_i32, %c0_i32_0 : i32, i32
  }
  func.func @transform_3(%arg0: i32) -> (i32, i32) {
    %c0_i32 = arith.constant 0 : i32
    %c0_i32_0 = arith.constant 0 : i32
    %c0_i32_1 = arith.constant 0 : i32
    return %c0_i32, %c0_i32_0 : i32, i32
  }
  func.func @transform_4(%arg0: i32) -> (i32, i32) {
    %c0_i32 = arith.constant 0 : i32
    %c0_i32_0 = arith.constant 0 : i32
    %c0_i32_1 = arith.constant 0 : i32
    return %c0_i32, %c0_i32_0 : i32, i32
  }
  func.func @transform_5(%arg0: i32) -> (i32, i32) {
    %c0_i32 = arith.constant 0 : i32
    %c0_i32_0 = arith.constant 0 : i32
    %c0_i32_1 = arith.constant 0 : i32
    return %c0_i32, %c0_i32_0 : i32, i32
  }
  func.func @transform_6(%arg0: i32) -> (i32, i32) {
    %c0_i32 = arith.constant 0 : i32
    %c0_i32_0 = arith.constant 0 : i32
    %c0_i32_1 = arith.constant 0 : i32
    return %c0_i32, %c0_i32_0 : i32, i32
  }
  func.func @transform_7(%arg0: i32) -> (i32, i32) {
    %c0_i32 = arith.constant 0 : i32
    %c0_i32_0 = arith.constant 0 : i32
    return %c0_i32, %arg0 : i32, i32
  }
}

</mosaic_0001>

<bundles_post_ra>
// kernel: menet_forward.1
= control target key start
LH: loop header
LB: loop body
LE: loop exit
PB: predicated region body
PF: predicated region fallthrough
CT: control target
= control target key end

     0   :  { %vm60_vm0 = vcmask 1041408   ;;  %vm50_vm1 = vcmask 15360   ;;  %v375_v0 = vmov 0.0   ;;  %vm376_vm2 = vmmov 0   ;;  %s462_s0 = inlined_call_operand.vmem [shape: f32[2,128], index: 0, kind: input, shape index: {}]   ;;  %s463_s1 = inlined_call_operand.vmem [shape: f32[20,2], index: 1, kind: input, shape index: {}]   ;;  %s464_s2 = inlined_call_operand.vmem [shape: f32[20,1], index: 2, kind: input, shape index: {}]   ;;  %s465_s6 = inlined_call_operand.<no memory space> [shape: f32[1,1], index: 6, kind: input, shape index: {}]   ;;  %s466_s4 = inlined_call_operand.vmem [shape: f32[5,1], index: 4, kind: input, shape index: {}]   ;;  %s467_s3 = inlined_call_operand.vmem [shape: f32[5,20], index: 3, kind: input, shape index: {}]   ;;  %s468_s5 = inlined_call_operand.vmem [shape: f32[1,5], index: 5, kind: input, shape index: {}]   ;;  %s469_s7 = inlined_call_operand.vmem [shape: f32[1,128], index: 7, kind: output, shape index: {}]  }
   0x1   :  { %345 = vmatprep.subr.mxu0 %v375_v0  ;;  %v28_v1 = vld [vmem:[%s462_s0] sm:$0x3]  ;;  %347 = vmatprep.mubr.msk.f32.mxu0 %vm376_vm2, %v375_v0  ;;  %v12_v3 = vstv %s465_s6  ;;  %v377_v4 = vmov 0   ;;  %v34_v5 = vld [vmem:[%s464_s2 + $0x10] sm:$0xf]  ;;  %v30_v7 = vld [vmem:[%s463_s1 + $0x8] sm:$0xff]  ;;  %v240_v34 = vlaneseq }
   0x2   :  { %v29_v2 = vld [vmem:[%s463_s1] sm:$0xff]  ;;  %346 = vmatpush3.msk.msra.mxu0 %vm60_vm0, %v28_v1  ;;  %373 = vset.pattern.permute.xlu0 %v377_v4  ;;  %13 = vst [vmem:[#allocation2] sm:$0x1] %v12_v3  ;;  %v33_v8 = vld [vmem:[%s464_s2 + $0x8] sm:$0xff]  ;;  %v31_v10 = vld [vmem:[%s463_s1 + $0x10] sm:$0xf] }
   0x3   :  { %v32_v6 = vld [vmem:[%s464_s2] sm:$0xff]  ;;  %348 = vmatmul.mubr.msk.f32.vlgmr.msra.gmra.mxu0 %vm50_vm1, %v29_v2  ;;  %47 = vperm.xlu0 %373, %v34_v5   ;;  %vm158_vm3 = vcmask 1043456   ;;  %vm154_vm4 = vcmask 162816   ;;  %vm248_vm5 = vcmask 1044480   ;;  %vm244_vm6 = vcmask 39936  }
   0x4   :  { %350 = vmatprep.mubr.msk.f32.mxu0 %vm376_vm2, %v375_v0  ;;  %374 = vset.pattern.permute.xlu1 %v377_v4  ;;  %v148_v9 = vld [vmem:[%s466_s4] sm:$0x1f]  ;;  %v241_v35 = vshrl.u32 %v240_v34, 7 }
   0x5   :  { %37 = vperm.xlu1 %374, %v32_v6   ;;  %356 = vmatprep.subr.mxu1 %v375_v0  ;;  %v147_v27 = vld [vmem:[%s467_s3] sm:$0x1f] }
   0x6   :  { %362 = vmatprep.mubr.msk.f32.mxu1 %vm376_vm2, %v375_v0  ;;  %v233_v33 = vld [vmem:[%s468_s5] sm:$0x1]  ;;  %v242_v36 = vsub.s32 0, %v241_v35 }
   0x7   :  { %351 = vmatmul.mubr.msk.f32.gmra.mxu0 %vm50_vm1, %v30_v7  ;;  %42 = vperm.xlu0 %373, %v33_v8  }
   0x8   :  { %353 = vmatprep.mubr.msk.f32.mxu0 %vm376_vm2, %v375_v0 }
   0x9   :  { %v234_v11 = vld [vmem:[#allocation2] sm:$0x1]  ;;  %151 = vperm.xlu1 %374, %v148_v9  }
   0xb   :  { %354 = vmatmul.mubr.msk.f32.gmra.mxu0 %vm50_vm1, %v31_v10  ;;  %237 = vperm.xlu0 %373, %v234_v11  }
  0x7e   :  { %v48_v13 = vpop.permute.xlu0 %47 }
  0x80   :  { %v38_v17 = vpop.permute.xlu1 %37 }
  0x82   :  { %v43_v18 = vpop.permute.xlu0 %42 }
  0x84   :  { %v152_v28 = vpop.permute.xlu1 %151 }
  0x86   :  { %v238_v37 = vpop.permute.xlu0 %237 }
  0x87   :  { %v243_v38 = vrot.slane %v238_v37, %v242_v36 }
  0xc3   :  { %v130_v12 = vpop.f32.mrf.mxu0 }
  0xc4   :  { %v131_v23 = vadd.f32 %v130_v12, %v38_v17 }
  0xc5   :  { %v349_v14 = vpop.f32.mrf.mxu0 }
  0xc6   :  { %v144_v26 = vmax.f32 %v131_v23, 0.0 }
  0xc7   :  { %v135_v15 = vpop.f32.mrf.mxu0 }
  0xc8   :  { %v136_v20 = vadd.f32 %v135_v15, %v43_v18 }
  0xc9   :  { %v352_v16 = vpop.f32.mrf.mxu0 }
  0xca   :  { %v145_v25 = vmax.f32 %v136_v20, 0.0 }
  0xcb   :  { %v140_v19 = vpop.f32.mrf.mxu0 }
  0xcc   :  { %v141_v21 = vadd.f32 %v140_v19, %v48_v13 }
  0xcd   :  { %v355_v22 = vpop.f32.mrf.mxu0 }
  0xce   :  { %v146_v24 = vmax.f32 %v141_v21, 0.0 }
  0xd0   :  { %357 = vmatpush3.msk.msra.mxu1 %vm158_vm3, %v146_v24 }
  0xd1   :  { %358 = vmatprep.subr.mxu1 %v375_v0 }
  0xd2   :  { %359 = vmatpush3.msra.mxu1 %v145_v25 }
  0xd3   :  { %360 = vmatprep.subr.mxu1 %v375_v0 }
  0xd4   :  { %361 = vmatpush3.msra.mxu1 %v144_v26 }
  0xd5   :  { %363 = vmatmul.mubr.msk.f32.vlgmr.msra.gmra.mxu1 %vm154_vm4, %v147_v27  ;;  %365 = vmatprep.subr.mxu1 %v375_v0 }
  0xd6   :  { %367 = vmatprep.mubr.msk.f32.mxu1 %vm376_vm2, %v375_v0 }
 0x195   :  { %v228_v29 = vpop.f32.mrf.mxu1 }
 0x196   :  { %v229_v30 = vadd.f32 %v228_v29, %v152_v28 }
 0x197   :  { %v364_v31 = vpop.f32.mrf.mxu1 }
 0x198   :  { %v232_v32 = vmax.f32 %v229_v30, 0.0 }
 0x19a   :  { %366 = vmatpush3.msk.msra.mxu1 %vm248_vm5, %v232_v32 }
 0x19b   :  { %368 = vmatmul.mubr.msk.f32.vlgmr.msra.gmra.mxu1 %vm244_vm6, %v233_v33 }
 0x25b   :  { %v318_v39 = vpop.f32.mrf.mxu1 }
 0x25c   :  { %v319_v40 = vadd.f32 %v318_v39, %v243_v38 }
 0x25d   :  { %v369_v41 = vpop.f32.mrf.mxu1 }
 0x25e   :  { %322 = vst [vmem:[%s469_s7] sm:$0x1] %v319_v40 }

</bundles_post_ra>
